<compile_context>
chip_gen: v7x
topology: tpu7x:2x2x1
jax: 0.10.0
libtpu: 0.0.40
codegen_flags: <defaults>
</compile_context>

<pallas_src>
import functools

import jax
import jax.numpy as jnp
from jax.experimental import pallas as pl
from jax.experimental.pallas import tpu as pltpu


def _attention_pool_kernel(x_ref, w_ref, o_ref, m_sc, d_sc, acc_sc, *,
                           seq_len, tile_s, need_mask):
    # x_ref : VMEM (tb, H, tile_s)  features, native (B, H, S) layout
    # w_ref : VMEM (tb, 1, H)       nn.Linear(H, 1).weight, one row per batch
    # o_ref : VMEM (tb, 1, H)       pooled output
    # m_sc  : VMEM (tb, 1, 1) f32   running max of scores
    # d_sc  : VMEM (tb, 1, 1) f32   running softmax denominator
    # acc_sc: VMEM (tb, 1, H) f32   running unnormalized weighted feature sum
    k = pl.program_id(1)
    n_k = pl.num_programs(1)

    @pl.when(k == 0)
    def _init():
        m_sc[...] = jnp.full_like(m_sc, -jnp.inf)
        d_sc[...] = jnp.zeros_like(d_sc)
        acc_sc[...] = jnp.zeros_like(acc_sc)

    if need_mask:
        # Number of valid sequence positions in this tile (== tile_s except on
        # the final tile).
        rem = seq_len - k * tile_s
        lane = jax.lax.broadcasted_iota(jnp.int32, (1, 1, tile_s), 2)
        valid = lane < rem                                   # (1, 1, tile_s)

        # Only the tail tile contains padding lanes.  Sanitize them in-place in
        # the VMEM input block, gated on the tail tile, so every other tile
        # pays nothing and 0 * <garbage/NaN> can never poison the MXU
        # contraction below.
        @pl.when(k == n_k - 1)
        def _sanitize_tail():
            zero = jnp.zeros((), dtype=x_ref.dtype)
            x_ref[...] = jnp.where(valid, x_ref[...], zero)

    # Lane-dense attention scores on the MXU, per batch row:
    #   (tb, 1, H) @ (tb, H, tS) -> (tb, 1, tS)
    # (bias omitted: softmax(s + b) == softmax(s))
    s = jnp.einsum("bqh,bhk->bqk", w_ref[...], x_ref[...],
                   preferred_element_type=jnp.float32)
    if need_mask:
        # Cheap (tb, 1, tS) mask; all-true passthrough on non-tail tiles.
        s = jnp.where(valid, s, -jnp.inf)

    # Online softmax update.
    m_prev = m_sc[...]                                             # (tb, 1, 1)
    m_new = jnp.maximum(m_prev, jnp.max(s, axis=2, keepdims=True))
    corr = jnp.exp(m_prev - m_new)                                 # (tb, 1, 1)
    e = jnp.exp(s - m_new)                                         # (tb, 1, tS)
    d_sc[...] = corr * d_sc[...] + jnp.sum(e, axis=2, keepdims=True)

    # Unnormalized weighted feature sum on the MXU, contracting the sequence
    # axis of both operands ("NT" pattern): (tb,1,tS) x (tb,H,tS) -> (tb,1,H).
    contrib = jnp.einsum("bqk,bhk->bqh", e.astype(x_ref.dtype), x_ref[...],
                         preferred_element_type=jnp.float32)
    acc_sc[...] = corr * acc_sc[...] + contrib
    m_sc[...] = m_new

    @pl.when(k == n_k - 1)
    def _finalize():
        # Exact divide: runs once per batch block, off the critical path, so
        # there is no reason to pay the approximate-reciprocal error.
        o_ref[...] = (acc_sc[...] / d_sc[...]).astype(o_ref.dtype)


def attention_pool(features, weight, bias=None, *, seq_tile=2048):
    """AttentionPool forward.

    features: (B, H, S)    -- same layout the PyTorch module receives
    weight:   (1, H)       -- nn.Linear(H, 1).weight
    bias:     (1,) or None -- nn.Linear(H, 1).bias; mathematically a no-op for
                              the output (softmax is shift-invariant), unused.
    returns:  (B, H)
    """
    del bias  # softmax(x @ W.T + b) == softmax(x @ W.T)

    B, H, S = features.shape
    dtype = features.dtype
    itemsize = jnp.dtype(dtype).itemsize

    # ---- Sequence tile: as large as possible (fewer grid steps, longer DMA
    # rows), capped by a per-buffer VMEM budget so the double-buffered feature
    # blocks stay inside every generation's scoped-VMEM budget (v5e 16 MiB
    # default, v7x 32 MiB scoped / 64 MiB physical).
    feat_budget_per_buf = 8 * 1024 * 1024            # bytes; x2 double buffer
    max_ts_vmem = max(
        128, (feat_budget_per_buf // max(H * itemsize, 1)) // 128 * 128)
    ts_cap = max(128, min(int(seq_tile), int(max_ts_vmem)))
    if S <= ts_cap:
        t_s = S                      # whole sequence in one tile, no masking
    else:
        base = (ts_cap // 128) * 128
        t_s = base
        # Prefer a 128-multiple (>= base/2) that divides S: no tail mask then.
        for cand in range(base, max(base // 2, 128) - 1, -128):
            if S % cand == 0:
                t_s = cand
                break
    n_s = pl.cdiv(S, t_s)
    need_mask = (S % t_s) != 0

    # ---- Batch tile: amortize per-grid-step overhead and make feature DMA
    # contiguous, but keep >= 2 batch blocks on the leading "parallel" axis so
    # both TensorCores get work on v7x.
    per_batch_bytes = H * t_s * itemsize
    tb_cap = int(min(8, B, max(1, feat_budget_per_buf // per_batch_bytes)))
    divisors = [d for d in range(1, tb_cap + 1) if B % d == 0]
    balanced = [d for d in divisors if B // d >= 2]
    tb = max(balanced) if balanced else max(divisors)

    # Pre-broadcast the (1, H) weight to one row per batch in the block so the
    # in-kernel score matmul is a plain batched MXU matmul (no in-kernel
    # broadcast / reshape).
    w3 = jnp.broadcast_to(jnp.reshape(weight, (1, 1, H)), (tb, 1, H)).astype(dtype)

    kernel = functools.partial(
        _attention_pool_kernel, seq_len=S, tile_s=t_s, need_mask=need_mask)

    out3 = pl.pallas_call(
        kernel,
        out_shape=jax.ShapeDtypeStruct((B, 1, H), dtype),
        grid=(B // tb, n_s),
        in_specs=[
            pl.BlockSpec((tb, H, t_s), lambda b, k: (b, 0, k)),   # features
            pl.BlockSpec((tb, 1, H), lambda b, k: (0, 0, 0)),     # weight
        ],
        out_specs=pl.BlockSpec((tb, 1, H), lambda b, k: (b, 0, 0)),
        scratch_shapes=[
            pltpu.VMEM((tb, 1, 1), jnp.float32),   # running max
            pltpu.VMEM((tb, 1, 1), jnp.float32),   # running denominator
            pltpu.VMEM((tb, 1, H), jnp.float32),   # running weighted sum
        ],
        compiler_params=pltpu.CompilerParams(
            dimension_semantics=("parallel", "arbitrary"),
            vmem_limit_bytes=32 * 1024 * 1024),
    )(features, w3)
    return out3.reshape(B, H)


def attention_pool_ref(features, weight, bias):
    """Pure-JAX reference mirroring the PyTorch forward exactly (with bias)."""
    x = jnp.transpose(features, (0, 2, 1))                  # (B, S, H)
    scores = jnp.einsum("bsh,oh->bso", x, weight) + bias    # (B, S, 1)
    wts = jax.nn.softmax(scores, axis=1)
    return jnp.sum(x * wts, axis=1)                         # (B, H)


if __name__ == "__main__":
    key = jax.random.PRNGKey(0)
    k1, k2, k3 = jax.random.split(key, 3)

    # Small shapes consistent with the module: batch=2, hidden=32, seq=8.
    B, H, S = 2, 32, 8
    features = jax.random.normal(k1, (B, H, S), dtype=jnp.float32)
    # Deterministic synthetic "nn.Linear(H, 1)" parameters.
    weight = jax.random.normal(k2, (1, H), dtype=jnp.float32) * 0.1
    bias = jax.random.normal(k3, (1,), dtype=jnp.float32) * 0.1

    out = jax.block_until_ready(attention_pool(features, weight, bias))
    ref = attention_pool_ref(features, weight, bias)
    assert out.shape == (B, H)
    assert jnp.allclose(out, ref, atol=2e-3, rtol=2e-3), (out, ref)

    # Multi-tile online-softmax path incl. the pl.when-gated masked tail tile.
    S2 = 200
    features2 = jax.random.normal(k1, (B, H, S2), dtype=jnp.float32)
    out2 = jax.block_until_ready(
        attention_pool(features2, weight, bias, seq_tile=128))
    ref2 = attention_pool_ref(features2, weight, bias)
    assert jnp.allclose(out2, ref2, atol=2e-3, rtol=2e-3), (out2, ref2)

    # Batch-blocked path (tb > 1) combined with multi-tile + tail mask.
    B3 = 4
    features3 = jax.random.normal(k3, (B3, H, S2), dtype=jnp.float32)
    out3 = jax.block_until_ready(
        attention_pool(features3, weight, bias, seq_tile=128))
    ref3 = attention_pool_ref(features3, weight, bias)
    assert jnp.allclose(out3, ref3, atol=2e-3, rtol=2e-3), (out3, ref3)

    print("KERNEL_OK")
</pallas_src>

<mosaic_0001>
module attributes {stable_mosaic.version = 11 : i64} {
  func.func @_attention_pool_kernel(%arg0: i32, %arg1: i32, %arg2: memref<1x32x8xf32, #tpu.memory_space<vmem>>, %arg3: memref<1x1x32xf32, #tpu.memory_space<vmem>>, %arg4: memref<1x1x32xf32, #tpu.memory_space<vmem>>, %arg5: memref<1x1x1xf32, #tpu.memory_space<vmem>>, %arg6: memref<1x1x1xf32, #tpu.memory_space<vmem>>, %arg7: memref<1x1x32xf32, #tpu.memory_space<vmem>>) attributes {dimension_semantics = [#tpu.dimension_semantics<parallel>, #tpu.dimension_semantics<arbitrary>], iteration_bounds = array<i64: 2, 1>, scalar_prefetch = 0 : i64, scratch_operands = 3 : i64, tpu.core_type = #tpu.core_type<tc>, window_params = [{transform_indices = @transform_0, window_bounds = array<i64: 1, 32, 8>}, {pipeline_mode = #tpu.pipeline_mode<synchronous>, transform_indices = @transform_1, window_bounds = array<i64: 1, 1, 32>}, {transform_indices = @transform_2, window_bounds = array<i64: 1, 1, 32>}]} {
    %c0_i32 = arith.constant 0 : i32
    %0 = arith.cmpi eq, %arg1, %c0_i32 : i32
    %1 = arith.extui %0 : i1 to i32
    %c0_i32_0 = arith.constant 0 : i32
    %2 = arith.cmpi ne, %1, %c0_i32_0 : i32
    scf.if %2 {
      %cst_32 = arith.constant 0xFF800000 : f32
      %32 = vector.broadcast %cst_32 : f32 to vector<1x1x1xf32>
      %c0_33 = arith.constant 0 : index
      %c0_34 = arith.constant 0 : index
      %c0_35 = arith.constant 0 : index
      %33 = vector.load %arg5[%c0_33, %c0_34, %c0_35] : memref<1x1x1xf32, #tpu.memory_space<vmem>>, vector<1x1x1xf32>
      tpu.vector_store %arg5[%c0_33, %c0_34, %c0_35], %32 {strides = array<i32>} : memref<1x1x1xf32, #tpu.memory_space<vmem>>, vector<1x1x1xf32>,
      %cst_36 = arith.constant 0.000000e+00 : f32
      %34 = vector.broadcast %cst_36 : f32 to vector<1x1x1xf32>
      %c0_37 = arith.constant 0 : index
      %c0_38 = arith.constant 0 : index
      %c0_39 = arith.constant 0 : index
      %35 = vector.load %arg6[%c0_37, %c0_38, %c0_39] : memref<1x1x1xf32, #tpu.memory_space<vmem>>, vector<1x1x1xf32>
      tpu.vector_store %arg6[%c0_37, %c0_38, %c0_39], %34 {strides = array<i32>} : memref<1x1x1xf32, #tpu.memory_space<vmem>>, vector<1x1x1xf32>,
      %cst_40 = arith.constant 0.000000e+00 : f32
      %36 = vector.broadcast %cst_40 : f32 to vector<1x1x32xf32>
      %c0_41 = arith.constant 0 : index
      %c0_42 = arith.constant 0 : index
      %c0_43 = arith.constant 0 : index
      %37 = vector.load %arg7[%c0_41, %c0_42, %c0_43] : memref<1x1x32xf32, #tpu.memory_space<vmem>>, vector<1x1x32xf32>
      tpu.vector_store %arg7[%c0_41, %c0_42, %c0_43], %36 {strides = array<i32>} : memref<1x1x32xf32, #tpu.memory_space<vmem>>, vector<1x1x32xf32>,
    } else {
    }
    %c0 = arith.constant 0 : index
    %c0_1 = arith.constant 0 : index
    %c0_2 = arith.constant 0 : index
    %3 = vector.load %arg3[%c0, %c0_1, %c0_2] : memref<1x1x32xf32, #tpu.memory_space<vmem>>, vector<1x1x32xf32>
    %c0_3 = arith.constant 0 : index
    %c0_4 = arith.constant 0 : index
    %c0_5 = arith.constant 0 : index
    %4 = vector.load %arg2[%c0_3, %c0_4, %c0_5] : memref<1x32x8xf32, #tpu.memory_space<vmem>>, vector<1x32x8xf32>
    "tpu.trace_start"() <{level = 10 : i32, message = "bqh,bhk->bqk"}> : () -> ()
    %cst = arith.constant dense<0.000000e+00> : vector<1x1x8xf32>
    %5 = tpu.matmul %3, %4, %cst {dimension_numbers = #tpu.dot_dimension_numbers<[2], [1], [1], [2], [0, 0, 0, 1, 1, 2], [0], [0]>} : vector<1x1x32xf32>, vector<1x32x8xf32>, vector<1x1x8xf32> -> vector<1x1x8xf32>
    "tpu.trace_stop"() : () -> ()
    %c0_6 = arith.constant 0 : index
    %c0_7 = arith.constant 0 : index
    %c0_8 = arith.constant 0 : index
    %6 = vector.load %arg5[%c0_6, %c0_7, %c0_8] : memref<1x1x1xf32, #tpu.memory_space<vmem>>, vector<1x1x1xf32>
    %cst_9 = arith.constant dense<0xFF800000> : vector<1x1xf32>
    %7 = vector.multi_reduction <maximumf>, %5, %cst_9 [2] : vector<1x1x8xf32> to vector<1x1xf32>
    %8 = vector.shape_cast %7 : vector<1x1xf32> to vector<1x1x1xf32>
    %9 = arith.maximumf %6, %8 : vector<1x1x1xf32>
    %10 = arith.subf %6, %9 : vector<1x1x1xf32>
    %11 = math.exp %10 : vector<1x1x1xf32>
    %12 = vector.broadcast %9 : vector<1x1x1xf32> to vector<1x1x8xf32>
    %13 = arith.subf %5, %12 : vector<1x1x8xf32>
    %14 = math.exp %13 : vector<1x1x8xf32>
    %c0_10 = arith.constant 0 : index
    %c0_11 = arith.constant 0 : index
    %c0_12 = arith.constant 0 : index
    %15 = vector.load %arg6[%c0_10, %c0_11, %c0_12] : memref<1x1x1xf32, #tpu.memory_space<vmem>>, vector<1x1x1xf32>
    %16 = arith.mulf %11, %15 : vector<1x1x1xf32>
    %cst_13 = arith.constant dense<0.000000e+00> : vector<1x1xf32>
    %17 = vector.multi_reduction <add>, %14, %cst_13 [2] : vector<1x1x8xf32> to vector<1x1xf32>
    %18 = vector.shape_cast %17 : vector<1x1xf32> to vector<1x1x1xf32>
    %19 = arith.addf %16, %18 : vector<1x1x1xf32>
    %c0_14 = arith.constant 0 : index
    %c0_15 = arith.constant 0 : index
    %c0_16 = arith.constant 0 : index
    %20 = vector.load %arg6[%c0_14, %c0_15, %c0_16] : memref<1x1x1xf32, #tpu.memory_space<vmem>>, vector<1x1x1xf32>
    tpu.vector_store %arg6[%c0_14, %c0_15, %c0_16], %19 {strides = array<i32>} : memref<1x1x1xf32, #tpu.memory_space<vmem>>, vector<1x1x1xf32>,
    %c0_17 = arith.constant 0 : index
    %c0_18 = arith.constant 0 : index
    %c0_19 = arith.constant 0 : index
    %21 = vector.load %arg2[%c0_17, %c0_18, %c0_19] : memref<1x32x8xf32, #tpu.memory_space<vmem>>, vector<1x32x8xf32>
    "tpu.trace_start"() <{level = 10 : i32, message = "bqk,bhk->bqh"}> : () -> ()
    %cst_20 = arith.constant dense<0.000000e+00> : vector<1x1x32xf32>
    %22 = tpu.matmul %14, %21, %cst_20 {dimension_numbers = #tpu.dot_dimension_numbers<[2], [2], [1], [1], [0, 0, 0, 1, 1, 1], [0], [0]>} : vector<1x1x8xf32>, vector<1x32x8xf32>, vector<1x1x32xf32> -> vector<1x1x32xf32>
    "tpu.trace_stop"() : () -> ()
    %c0_21 = arith.constant 0 : index
    %c0_22 = arith.constant 0 : index
    %c0_23 = arith.constant 0 : index
    %23 = vector.load %arg7[%c0_21, %c0_22, %c0_23] : memref<1x1x32xf32, #tpu.memory_space<vmem>>, vector<1x1x32xf32>
    %24 = vector.broadcast %11 : vector<1x1x1xf32> to vector<1x1x32xf32>
    %25 = arith.mulf %24, %23 : vector<1x1x32xf32>
    %26 = arith.addf %25, %22 : vector<1x1x32xf32>
    %c0_24 = arith.constant 0 : index
    %c0_25 = arith.constant 0 : index
    %c0_26 = arith.constant 0 : index
    %27 = vector.load %arg7[%c0_24, %c0_25, %c0_26] : memref<1x1x32xf32, #tpu.memory_space<vmem>>, vector<1x1x32xf32>
    tpu.vector_store %arg7[%c0_24, %c0_25, %c0_26], %26 {strides = array<i32>} : memref<1x1x32xf32, #tpu.memory_space<vmem>>, vector<1x1x32xf32>,
    %c0_27 = arith.constant 0 : index
    %c0_28 = arith.constant 0 : index
    %c0_29 = arith.constant 0 : index
    %28 = vector.load %arg5[%c0_27, %c0_28, %c0_29] : memref<1x1x1xf32, #tpu.memory_space<vmem>>, vector<1x1x1xf32>
    tpu.vector_store %arg5[%c0_27, %c0_28, %c0_29], %9 {strides = array<i32>} : memref<1x1x1xf32, #tpu.memory_space<vmem>>, vector<1x1x1xf32>,
    %c0_i32_30 = arith.constant 0 : i32
    %29 = arith.cmpi eq, %arg1, %c0_i32_30 : i32
    %30 = arith.extui %29 : i1 to i32
    %c0_i32_31 = arith.constant 0 : i32
    %31 = arith.cmpi ne, %30, %c0_i32_31 : i32
    scf.if %31 {
      %c0_32 = arith.constant 0 : index
      %c0_33 = arith.constant 0 : index
      %c0_34 = arith.constant 0 : index
      %32 = vector.load %arg7[%c0_32, %c0_33, %c0_34] : memref<1x1x32xf32, #tpu.memory_space<vmem>>, vector<1x1x32xf32>
      %c0_35 = arith.constant 0 : index
      %c0_36 = arith.constant 0 : index
      %c0_37 = arith.constant 0 : index
      %33 = vector.load %arg6[%c0_35, %c0_36, %c0_37] : memref<1x1x1xf32, #tpu.memory_space<vmem>>, vector<1x1x1xf32>
      %34 = vector.broadcast %33 : vector<1x1x1xf32> to vector<1x1x32xf32>
      %35 = arith.divf %32, %34 : vector<1x1x32xf32>
      %c0_38 = arith.constant 0 : index
      %c0_39 = arith.constant 0 : index
      %c0_40 = arith.constant 0 : index
      %36 = vector.load %arg4[%c0_38, %c0_39, %c0_40] : memref<1x1x32xf32, #tpu.memory_space<vmem>>, vector<1x1x32xf32>
      tpu.vector_store %arg4[%c0_38, %c0_39, %c0_40], %35 {strides = array<i32>} : memref<1x1x32xf32, #tpu.memory_space<vmem>>, vector<1x1x32xf32>,
    } else {
    }
    return
  }
  func.func @transform_0(%arg0: i32, %arg1: i32) -> (i32, i32, i32) {
    %c0_i32 = arith.constant 0 : i32
    %c0_i32_0 = arith.constant 0 : i32
    return %arg0, %c0_i32, %arg1 : i32, i32, i32
  }
  func.func @transform_1(%arg0: i32, %arg1: i32) -> (i32, i32, i32) {
    %c0_i32 = arith.constant 0 : i32
    %c0_i32_0 = arith.constant 0 : i32
    %c0_i32_1 = arith.constant 0 : i32
    %c0_i32_2 = arith.constant 0 : i32
    return %c0_i32, %c0_i32_0, %c0_i32_1 : i32, i32, i32
  }
  func.func @transform_2(%arg0: i32, %arg1: i32) -> (i32, i32, i32) {
    %c0_i32 = arith.constant 0 : i32
    %c0_i32_0 = arith.constant 0 : i32
    %c0_i32_1 = arith.constant 0 : i32
    return %arg0, %c0_i32, %c0_i32_0 : i32, i32, i32
  }
}

</mosaic_0001>

<bundles_post_ra>
// kernel: tpu_custom_call.1
= control target key start
LH: loop header
LB: loop body
LE: loop exit
PB: predicated region body
PF: predicated region fallthrough
CT: control target
= control target key end

     0   :  { %7 = vsyncpa [#allocation6], 0  ;;  %s841_s0 = inlined_call_operand.vmem [shape: f32[2,32,8], index: 0, kind: input, shape index: {}]   ;;  %s842_s1 = inlined_call_operand.vmem [shape: f32[1,1,32], index: 1, kind: input, shape index: {}]   ;;  %s843_s2 = inlined_call_operand.hbm [shape: f32[2,1,32], index: 2, kind: output, shape index: {}]  }
   0x1   :  { %9 = vsyncpa [#allocation6 + $0x1], 0  ;;  %s717_s9 = smov 0   ;;  %s719_s10 = smov 0  }
   0x2   :  { %s721_s11 = smov 0   ;;  %s723_s12 = smov 0  }
   0x3   :  { %s725_s13 = smov 0   ;;  %s727_s14 = smov 0  }
   0x4 LB: > { %s485_s15 = sadd.s32 4294967295, %s694_s14   ;;  %s486_s16 = sadd.s32 4294967294, %s694_s14   ;;  %s694_s14 = sphi %s727_s14, %s15_s14   ;;  %s690_s13 = sphi %s725_s13, %s850_s13   ;;  %s686_s12 = sphi %s723_s12, %s849_s12   ;;  %s682_s11 = sphi %s721_s11, %s848_s11   ;;  %s678_s10 = sphi %s719_s10, %s847_s10   ;;  %s674_s9 = sphi %s717_s9, %s846_s9  }
   0x5   : > { %s27_s17 = sadd.s32 1, %s690_s13  ;;  %s83_s18 = sadd.s32 1, %s682_s11 }
   0x6   : > { %p29_p0 = scmp.ge.s32.totalorder %s27_s17, 2  ;;  %p93_p1 = scmp.ne.s32.totalorder %s682_s11, %s678_s10 }
   0x7   : > { %p94_p2 = scmp.eq.s32.totalorder %s485_s15, 1  ;;  %p99_p3 = scmp.ne.s32.totalorder %s678_s10, %s674_s9 }
   0x8   : > { %s852_s17 = smov (%p29_p0, %s27_s17), 0  ;;  %p100_p5 = scmp.eq.s32.totalorder %s486_s16, 1 }
   0x9   : > { %p757_p4 = por %p94_p2, %p93_p1  ;;  %s80_s20 = ssub.s32 %s690_s13, %s852_s17 }
   0xa   : > { %p489_p6 = scmp.ge.s32.totalorder %s694_s14, 1  ;;  %p81_p7 = scmp.eq.s32.totalorder %s80_s20, 0 }
   0xb   : > { %p764_p8 = por %p100_p5, %p99_p3  ;;  %p132_p9 = scmp.lt.s32.totalorder %s694_s14, 3 }
   0xc   : > { %s770_s22 = scalar_select %p81_p7, %s682_s11, %s83_s18  }
   0xd   : > { %p133_p10 = pnand %p489_p6, %p132_p9 }
   0xe   : > { %p156_p11 = scmp.lt.s32.totalorder (!%p133_p10), %s686_s12, 1  ;;  %vm168_vm0 = vcmask (!%p133_p10), 0   ;;  %v696_v0 = vmov (!%p133_p10), 0.0|0.0   ;;  %v697_v1 = vmov (!%p133_p10), 0.0   ;;  %vm698_vm1 = vmmov (!%p133_p10), 0   ;;  %s154_s30 = sand.u32 (!%p133_p10), 1, %s678_s10  }
   0xf   : > { %136 = sbr.rel (%p133_p10) target bundleno = 848 (0x350), region = 28  ;;  %534 = vmatprep.subr.bf16.mxu0 (!%p133_p10), %v696_v0  ;;  %170 = vst.msk [vmem:[#allocation3] sm:$0x1] (!%p133_p10), %vm168_vm0, %v697_v1  ;;  %520 = vmatprep.mubr.msk.f32.mxu0 (!%p133_p10), %vm698_vm1, %v697_v1  ;;  %v173_v8 = vld [vmem:[%s842_s1] sm:$0x1] (!%p133_p10)  ;;  %vm178_vm2 = vcmask (!%p133_p10), 261120   ;;  %v266_v18 = vlaneseq (!%p133_p10) }
  0x10   : > { %540 = vmatprep.subr.bf16.mxu1 (!%p133_p10), %v696_v0  ;;  %531 = vmatprep.mubr.msk.f32.mxu1 (!%p133_p10), %vm698_vm1, %v697_v1  ;;  %v699_v9 = vmov (!%p133_p10), -inf   ;;  %vm253_vm3 = vcmask (!%p133_p10), 57344   ;;  %v700_v13 = vmov (!%p133_p10), 0   ;;  %vm285_vm4 = vcmask (!%p133_p10), 64512   ;;  %s498_s3 = sshll.u32 (!%p133_p10), %s686_s12, 4  ;;  %s155_s4 = scalar_lea.vmem (!%p133_p10), [#allocation5], %s154_s30 }
  0x11   : > { %169 = vst.msk [vmem:[#allocation2] sm:$0x1] (!%p133_p10), %vm168_vm0, %v699_v9  ;;  %608 = vset.pattern.permute.xlu0 (!%p133_p10), %v700_v13  ;;  %609 = vset.pattern.permute.xlu1 (!%p133_p10), %v700_v13  ;;  %vm542_vm5 = vmpackc.low (!%p133_p10), %vm285_vm4, %vm285_vm4  ;;  %v267_v19 = vshrl.u32 (!%p133_p10), %v266_v18, 7  ;;  %vm171_vm6 = vcmask (!%p133_p10), 253952   ;;  %s416_s5 = sshll.u32 (!%p133_p10), %s155_s4, 4  ;;  %s793_s8 = scalar_lea.hbm (!%p133_p10), %s843_s2, %s498_s3  ;;  %s795_s5 = int_to_ptr.vmem [resolvable:$true] %s416_s5 }
  0x12   : > { %172 = vst.msk [vmem:[#allocation4] sm:$0x1] (!%p133_p10), %vm171_vm6, %v697_v1  ;;  %s404_s15 = scalar_lea.sflag (!%p133_p10), [#allocation6], %s154_s30  ;;  %s616_s16 = scalar_lea.vmem (!%p133_p10), %s795_s5, 16 }
  0x13   : > { %v268_v20 = vsub.s32 (!%p133_p10), 0, %v267_v19  ;;  %p617_p12 = scmp.ne.s32.totalorder (!%p133_p10), %s795_s5, %s616_s16 }
  0x15   : > { %p618_p13 = pnand (!%p133_p10), %p617_p12, %p757_p4 }
  0x16   : > { %s157_s23 = scalar_select %p156_p11, %s686_s12, 1  ;;  %v273_v29 = vld [vmem:[#allocation3] sm:$0x1] }
  0x17   : > { %p619_p0 = pneg %p618_p13  ;;  %s701_s12 = smov [#allocation5]  }
  0x18   : > { %s501_s24 = sshll.u32 %s157_s23, 5  ;;  %v252_v14 = vld [vmem:[#allocation2] sm:$0x1]  ;;  %s620_s18 = sshll.u32 %s701_s12, 4  ;;  %s621_s18 = int_to_ptr.vmem [resolvable:$false] %s620_s18 }
  0x19   : > { %s163_s27 = scalar_lea.vmem %s841_s0, %s501_s24  ;;  %v371_v36 = vld [vmem:[#allocation4] sm:$0x1]  ;;  %s622_s20 = scalar_lea.vmem %s621_s18, 32 }
  0x1a   : > { %v174_v2 = vld [vmem:[%s163_s27] sm:$0xff]  ;;  %v175_v3 = vld [vmem:[%s163_s27 + $0x8] sm:$0xff]  ;;  %v176_v4 = vld [vmem:[%s163_s27 + $0x10] sm:$0xff]  ;;  %p623_p1 = scmp.lt.s32.totalorder %s795_s5, %s621_s18  ;;  %p624_p2 = scmp.lt.s32.totalorder %s622_s20, %s616_s16 }
  0x1b   : > { %v535_v5 = vpack.c.bf16 %v175_v3, %v174_v2  ;;  %v177_v6 = vld [vmem:[%s163_s27 + $0x18] sm:$0xff] }
  0x1c   : > { %v538_v7 = vpack.c.bf16 %v177_v6, %v176_v4  ;;  %p625_p3 = por %p624_p2, %p623_p1 }
  0x1d   : > { %536 = vmatpush3.bf16.msra.mxu0 %v535_v5  ;;  %543 = vmatpush3.bf16.xpose.msk.msra.mxu1 %vm542_vm5, %v535_v5 }
  0x1e   : > { %537 = vmatprep.subr.bf16.mxu0 %v696_v0  ;;  %544 = vmatprep.subr.bf16.mxu1 %v696_v0  ;;  %p626_p5 = pnand %p625_p3, %p619_p0 }
  0x21   : > { %539 = vmatpush3.bf16.msra.mxu0 %v538_v7 }
  0x24   : > { %521 = vmatmul.mubr.msk.f32.vlgmr.msra.gmra.mrb[0].mxu0 %vm178_vm2, %v173_v8 }
  0x25   : > { %547 = vmatpush3.bf16.xpose.msk.msra.mxu1 %vm542_vm5, %v538_v7 }
  0xf7   : > { %v248_v10 = vpop.f32.mrb[0].mxu0 }
  0xf8   : > { %v522_v11 = vpop.f32.mrb[1].mxu0  ;;  %v254_v12 = vsel %vm253_vm3, %v248_v10, -inf }
  0xf9   : > { %255 = vmax.xlane.f32.xlu0 %v254_v12 }
 0x186   : > { %v256_v15 = vpop.xlane.xlu0 %255 }
 0x187   : > { %v257_v16 = vmax.f32 %v252_v14, %v256_v15 }
 0x189   : > { %v258_v17 = vsub.f32 %v252_v14, %v257_v16  ;;  %385 = vst.msk [vmem:[#allocation2] sm:$0x1] %vm168_vm0, %v257_v16  ;;  %263 = vperm.xlu0 %608, %v257_v16  }
 0x18b   : > { %v259_v27 = vmul.f32 1.442695, %v258_v17 }
 0x208   : > { %v264_v21 = vpop.permute.xlu0 %263 }
 0x209   : > { %v269_v22 = vrot.slane %v264_v21, %v268_v20 }
 0x20b   : > { %v270_v23 = vsub.f32 %v248_v10, %v269_v22 }
 0x20d   : > { %v271_v24 = vmul.f32 1.442695, %v270_v23 }
 0x20f   : > { %610 = vpow2.f32 %v271_v24 }
 0x210   : > { %612 = vpow2.f32 %v259_v27 }
 0x219   : > { %v611_v25 = vpop.eup %610 }
 0x21a   : > { %532 = vmatmul.mubr.msk.f32.vlgmr.msra.gmra.mrb[0].mxu1 %vm285_vm4, %v611_v25  ;;  %v275_v26 = vsel %vm253_vm3, %v611_v25, 0.0  ;;  %v613_v28 = vpop.eup %612 }
 0x21b   : > { %276 = vadd.xlane.f32.xlu1 %v275_v26  ;;  %v274_v30 = vmul.f32 %v613_v28, %v273_v29 }
 0x22c   : > { %374 = vperm.xlu1 %609, %v613_v28  }
 0x2a8   : > { %v277_v31 = vpop.xlane.xlu1 %276 }
 0x2a9   : > { %v278_v32 = vadd.f32 %v277_v31, %v274_v30 }
 0x2ab   : > { %280 = vst.msk [vmem:[#allocation3] sm:$0x1] %vm168_vm0, %v278_v32 }
 0x2ac   : > { %v375_v34 = vpop.permute.xlu1 %374 }
 0x2ad   : > { %v380_v35 = vrot.slane %v375_v34, %v268_v20 }
 0x2af   : > { %v381_v37 = vmul.f32 %v380_v35, %v371_v36 }
 0x2b2   : > { %v390_v33 = vld [vmem:[#allocation3] sm:$0x1] }
 0x2b3   : > { %393 = vperm.xlu1 %609, %v390_v33  }
 0x2ed   : > { %v367_v38 = vpop.f32.mrb[0].mxu1 }
 0x2ee   : > { %v382_v39 = vadd.f32 %v381_v37, %v367_v38  ;;  %v533_v40 = vpop.f32.mrb[1].mxu1 }
 0x2f0   : > { %384 = vst.msk [vmem:[#allocation4] sm:$0x1] %vm171_vm6, %v382_v39 }
 0x2f7   : > { %v389_v44 = vld [vmem:[#allocation4] sm:$0x1] }
 0x332   : > { %v394_v41 = vpop.permute.xlu1 %393 }
 0x333   : > { %v399_v42 = vrot.slane %v394_v41, %v268_v20 }
 0x335   : > { %614 = vrcp.f32 %v399_v42 }
 0x33f   : > { %v615_v43 = vpop.eup %614 }
 0x340   : > { %v401_v45 = vmul.f32 %v615_v43, %v389_v44 }
 0x342   : > { %402 = vst.msk [vmem:[%s155_s4] sm:$0x1] %vm171_vm6, %v401_v45 }
 0x343   : > { %629 = shalt.err (!%p626_p5)
}
 0x344   : > { %s630_s23 = scalar_lea.hbm %s793_s8, 16  ;;  %s634_s26 = scalar_lea.hbm %s843_s2, 32 }
 0x345   : > { %p631_p6 = scmp.ne.s32.totalorder %s793_s8, %s630_s23  ;;  %p635_p10 = scmp.lt.u32.totalorder %s793_s8, %s843_s2 }
 0x346   : > { %p636_p11 = scmp.lt.u32.totalorder %s634_s26, %s630_s23  ;;  %p638_p13 = scmp.lt.u32.totalorder %s630_s23, %s793_s8 }
 0x347   : > { %p632_p7 = pnand %p631_p6, %p757_p4 }
 0x348   : > { %p637_p12 = por %p636_p11, %p635_p10 }
 0x349   : > { %p633_p9 = pneg %p632_p7 }
 0x34a   : > { %p639_p0 = por %p638_p13, %p637_p12 }
 0x34c   : > { %p640_p1 = pnand %p639_p0, %p633_p9 }
 0x34e   : > { %643 = shalt.err (!%p640_p1)
}
 0x34f   : > { %548 = dma.vmem_to_hbm [thread:$0]  (%p757_p4), %s795_s5, 16, %s793_s8, %s404_s15  }
 0x350 PF: > { %p554_p2 = scmp.ge.s32.totalorder %s694_s14, 2  ;;  %s428_s29 = sand.u32 1, %s674_s9  }
 0x351   : > { %s429_s30 = scalar_lea.sflag [#allocation6], %s428_s29 }
 0x352   : > { %p551_p3 = pnand %p554_p2, %p764_p8 }
 0x354   : > { %669 = dma.done.wait (!%p551_p3), %s429_s30, 16  }
 0x355   : > { %671 = vsyncadd (!%p551_p3), %s429_s30, 4294967280  ;;  %s15_s14 = sadd.s32 1, %s694_s14   ;;  %s846_s9 = smov %s678_s10 }
 0x356   : > { %p12_p5 = scmp.ge.s32.totalorder %s15_s14, 4   ;;  %s847_s10 = smov %s682_s11 }
 0x357   : > { %s848_s11 = smov %s770_s22  ;;  %s849_s12 = smov %s690_s13 }
 0x358   : > { %s850_s13 = smov %s852_s17  ;;  %14 = sbr.rel (!%p12_p5) target bundleno = 4 (0x4), region = 71 }
 0x35f   :  { %433 = vsyncpa [#allocation6], 1 }
 0x360   :  { %435 = vsyncpa [#allocation6 + $0x1], 1 }

</bundles_post_ra>
